<compile_context>
chip_gen: v7x
topology: tpu7x:2x2x1
jax: 0.10.0
libtpu: 0.0.40
codegen_flags: <defaults>
</compile_context>

<pallas_src>
import jax
import jax.numpy as jnp
from jax.experimental import pallas as pl
from jax.experimental.pallas import tpu as pltpu


def _round_up(x, m):
    return ((x + m - 1) // m) * m


def _mlp_kernel(x_ref, w1_ref, b1_ref, w2_ref, b2_ref, o_ref):
    # Hidden layer: (TM, D_in) @ (D_in, H) on the MXU, f32 accumulator.
    h = jnp.dot(x_ref[...], w1_ref[...], preferred_element_type=jnp.float32)
    # Bias + ReLU in f32 on the VPU (b1 is (1, H) -> broadcast over rows).
    h = jnp.maximum(h + b1_ref[...], 0.0)
    # Output layer: feed the MXU in the weights' dtype (bf16 or f32), f32 acc.
    y = jnp.dot(h.astype(w2_ref.dtype), w2_ref[...],
                preferred_element_type=jnp.float32)
    o_ref[...] = (y + b2_ref[...]).astype(o_ref.dtype)


def static_behaviour_encoder(x, w1, b1, w2, b2, *, block_rows=None,
                             out_dtype=None, core_parallel=False):
    """x: (B, D_in); w1: (D_in, H); b1: (1, H) f32; w2: (H, D_out); b2: (1, D_out) f32.

    Weights are stored pre-transposed ((in, out)) relative to PyTorch's
    (out, in) so the kernel computes plain x @ W.  Returns (B, D_out).
    """
    B, d_in = x.shape
    hidden = w1.shape[1]
    d_out = w2.shape[1]
    out_dtype = x.dtype if out_dtype is None else jnp.dtype(out_dtype)

    x_isz = jnp.dtype(x.dtype).itemsize
    out_isz = jnp.dtype(out_dtype).itemsize
    sublane = 16 if x_isz == 2 else 8

    # Default row tile (perf review): 8192 rows f32 / 16384 rows bf16.
    if block_rows is None:
        block_rows = 16384 if x_isz == 2 else 8192

    # Per-row VMEM bytes: double-buffered x + out tiles, f32 hidden
    # intermediate (+ a bf16 copy when the second matmul takes bf16 weights).
    cast_isz = 0 if w2.dtype == jnp.float32 else jnp.dtype(w2.dtype).itemsize
    per_row = (2 * (d_in * x_isz + d_out * out_isz)
               + hidden * (4 + cast_isz))

    # Cap the working set at ~40 MiB so the tile is safe on v7x's 64 MiB/TC
    # VMEM (plenty of headroom on v5e/v6e's 128 MiB).
    vmem_budget = 40 << 20
    tm_cap = max(sublane, (vmem_budget // per_row) // sublane * sublane)
    block_rows = min(block_rows, tm_cap)

    # Row tile: clamp + round for small batches.
    tm = min(block_rows, _round_up(B, sublane))

    # If the whole (large) batch fits in one tile, split into >= 2 grid steps:
    # overlaps DMA with compute and lets both v7x TensorCores run.
    min_rows_per_step = 512
    if tm >= B and B >= 2 * min_rows_per_step:
        tm = max(min_rows_per_step, _round_up(pl.cdiv(B, 2), sublane))

    grid = (pl.cdiv(B, tm),)

    # Explicit scoped-VMEM limit (defaults are only 16 MiB v5e / 32 MiB
    # v6e,v7x); budget actual footprint + headroom, capped at 48 MiB (v7x-safe).
    weight_bytes = sum(a.size * jnp.dtype(a.dtype).itemsize
                       for a in (w1, b1, w2, b2))
    need = tm * per_row + 2 * weight_bytes + (2 << 20)
    vmem_limit = int(min(max(2 * need, 16 << 20), 48 << 20))

    itemsize = lambda a: a.size * jnp.dtype(a.dtype).itemsize
    cost = pl.CostEstimate(
        flops=2 * B * (d_in * hidden + hidden * d_out),
        transcendentals=0,
        bytes_accessed=(itemsize(x) + itemsize(w1) + itemsize(b1)
                        + itemsize(w2) + itemsize(b2)
                        + B * d_out * out_isz),
    )

    # Opt-in real 2-TensorCore split (v7x); plain "parallel" elsewhere.
    dim_sem = (pltpu.CORE_PARALLEL,) if core_parallel else ("parallel",)

    return pl.pallas_call(
        _mlp_kernel,
        out_shape=jax.ShapeDtypeStruct((B, d_out), out_dtype),
        grid=grid,
        in_specs=[
            pl.BlockSpec((tm, d_in), lambda i: (i, 0)),       # x: streamed rows
            pl.BlockSpec((d_in, hidden), lambda i: (0, 0)),   # w1: VMEM-resident
            pl.BlockSpec((1, hidden), lambda i: (0, 0)),      # b1: VMEM-resident
            pl.BlockSpec((hidden, d_out), lambda i: (0, 0)),  # w2: VMEM-resident
            pl.BlockSpec((1, d_out), lambda i: (0, 0)),       # b2: VMEM-resident
        ],
        out_specs=pl.BlockSpec((tm, d_out), lambda i: (i, 0)),
        compiler_params=pltpu.CompilerParams(
            dimension_semantics=dim_sem,
            vmem_limit_bytes=vmem_limit),
        cost_estimate=cost,
    )(x, w1, b1, w2, b2)


def init_params(key, input_dim=120, hidden_dim=64, output_dim=32,
                dtype=jnp.float32):
    """PyTorch nn.Linear default init (U[-1/sqrt(fan_in), +1/sqrt(fan_in)]).

    Weights stored as (in, out) = W^T vs PyTorch's (out, in); biases kept f32.
    """
    k1, k2, k3, k4 = jax.random.split(key, 4)
    bound1 = 1.0 / (input_dim ** 0.5)
    bound2 = 1.0 / (hidden_dim ** 0.5)
    w1 = jax.random.uniform(k1, (input_dim, hidden_dim), jnp.float32,
                            -bound1, bound1).astype(dtype)
    b1 = jax.random.uniform(k2, (1, hidden_dim), jnp.float32, -bound1, bound1)
    w2 = jax.random.uniform(k3, (hidden_dim, output_dim), jnp.float32,
                            -bound2, bound2).astype(dtype)
    b2 = jax.random.uniform(k4, (1, output_dim), jnp.float32, -bound2, bound2)
    return w1, b1, w2, b2


def _reference(x, w1, b1, w2, b2):
    h = jnp.maximum(x.astype(jnp.float32) @ w1.astype(jnp.float32) + b1, 0.0)
    return h @ w2.astype(jnp.float32) + b2


if __name__ == "__main__":
    key = jax.random.PRNGKey(0)
    k_params, k_x, k_x2, k_x3 = jax.random.split(key, 4)
    input_dim, hidden_dim, output_dim = 120, 64, 32

    # --- f32, small batch (matches the module's nominal usage) -------------
    w1, b1, w2, b2 = init_params(k_params, input_dim, hidden_dim, output_dim)
    x = jax.random.normal(k_x, (8, input_dim), jnp.float32)
    y = jax.block_until_ready(static_behaviour_encoder(x, w1, b1, w2, b2))
    y_ref = _reference(x, w1, b1, w2, b2)
    assert y.shape == (8, output_dim)
    assert jnp.allclose(y, y_ref, atol=1e-5, rtol=1e-5)

    # --- f32, larger batch: exercises the >=2-step grid split + a partial
    #     boundary tile (B=3000 -> tm=1504, grid=(2,)) ----------------------
    x_big = jax.random.normal(k_x2, (3000, input_dim), jnp.float32)
    y_big = jax.block_until_ready(
        static_behaviour_encoder(x_big, w1, b1, w2, b2))
    y_big_ref = _reference(x_big, w1, b1, w2, b2)
    assert y_big.shape == (3000, output_dim)
    assert jnp.allclose(y_big, y_big_ref, atol=1e-5, rtol=1e-5)

    # --- bf16 end-to-end (x, weights, output), f32 accumulate --------------
    w1_bf, b1_bf, w2_bf, b2_bf = init_params(
        k_params, input_dim, hidden_dim, output_dim, dtype=jnp.bfloat16)
    x_bf = jax.random.normal(k_x3, (4096, input_dim), jnp.bfloat16)
    y_bf = jax.block_until_ready(
        static_behaviour_encoder(x_bf, w1_bf, b1_bf, w2_bf, b2_bf))
    y_bf_ref = _reference(x_bf, w1_bf, b1_bf, w2_bf, b2_bf)
    assert y_bf.shape == (4096, output_dim)
    assert y_bf.dtype == jnp.bfloat16
    assert jnp.allclose(y_bf.astype(jnp.float32), y_bf_ref,
                        atol=5e-2, rtol=5e-2)

    # On v7x, call with core_parallel=True to shard the batch axis across
    # both TensorCores (pltpu.CORE_PARALLEL); kept opt-in for single-TC chips.

    print("KERNEL_OK")
</pallas_src>

<mosaic_0001>
module attributes {stable_mosaic.version = 11 : i64} {
  func.func @_mlp_kernel(%arg0: i32, %arg1: memref<8x120xf32, #tpu.memory_space<vmem>>, %arg2: memref<120x64xf32, #tpu.memory_space<vmem>>, %arg3: memref<1x64xf32, #tpu.memory_space<vmem>>, %arg4: memref<64x32xf32, #tpu.memory_space<vmem>>, %arg5: memref<1x32xf32, #tpu.memory_space<vmem>>, %arg6: memref<8x32xf32, #tpu.memory_space<vmem>>) attributes {dimension_semantics = [#tpu.dimension_semantics<parallel>], iteration_bounds = array<i64: 1>, scalar_prefetch = 0 : i64, scratch_operands = 0 : i64, tpu.core_type = #tpu.core_type<tc>, window_params = [{transform_indices = @transform_0, window_bounds = array<i64: 8, 120>}, {pipeline_mode = #tpu.pipeline_mode<synchronous>, transform_indices = @transform_1, window_bounds = array<i64: 120, 64>}, {pipeline_mode = #tpu.pipeline_mode<synchronous>, transform_indices = @transform_2, window_bounds = array<i64: 1, 64>}, {pipeline_mode = #tpu.pipeline_mode<synchronous>, transform_indices = @transform_3, window_bounds = array<i64: 64, 32>}, {pipeline_mode = #tpu.pipeline_mode<synchronous>, transform_indices = @transform_4, window_bounds = array<i64: 1, 32>}, {transform_indices = @transform_5, window_bounds = array<i64: 8, 32>}]} {
    %c0 = arith.constant 0 : index
    %c0_0 = arith.constant 0 : index
    %0 = vector.load %arg1[%c0, %c0_0] : memref<8x120xf32, #tpu.memory_space<vmem>>, vector<8x120xf32>
    %c0_1 = arith.constant 0 : index
    %c0_2 = arith.constant 0 : index
    %1 = vector.load %arg2[%c0_1, %c0_2] : memref<120x64xf32, #tpu.memory_space<vmem>>, vector<120x64xf32>
    %cst = arith.constant dense<0.000000e+00> : vector<8x64xf32>
    %2 = tpu.matmul %0, %1, %cst {dimension_numbers = #tpu.dot_dimension_numbers<[1], [0], [0], [1], [0, 0, 1, 1], [], []>} : vector<8x120xf32>, vector<120x64xf32>, vector<8x64xf32> -> vector<8x64xf32>
    %c0_3 = arith.constant 0 : index
    %c0_4 = arith.constant 0 : index
    %3 = vector.load %arg3[%c0_3, %c0_4] : memref<1x64xf32, #tpu.memory_space<vmem>>, vector<1x64xf32>
    %4 = vector.broadcast %3 : vector<1x64xf32> to vector<8x64xf32>
    %5 = arith.addf %2, %4 : vector<8x64xf32>
    %cst_5 = arith.constant 0.000000e+00 : f32
    %6 = vector.broadcast %cst_5 : f32 to vector<8x64xf32>
    %7 = arith.maximumf %5, %6 : vector<8x64xf32>
    %c0_6 = arith.constant 0 : index
    %c0_7 = arith.constant 0 : index
    %8 = vector.load %arg4[%c0_6, %c0_7] : memref<64x32xf32, #tpu.memory_space<vmem>>, vector<64x32xf32>
    %cst_8 = arith.constant dense<0.000000e+00> : vector<8x32xf32>
    %9 = tpu.matmul %7, %8, %cst_8 {dimension_numbers = #tpu.dot_dimension_numbers<[1], [0], [0], [1], [0, 0, 1, 1], [], []>} : vector<8x64xf32>, vector<64x32xf32>, vector<8x32xf32> -> vector<8x32xf32>
    %c0_9 = arith.constant 0 : index
    %c0_10 = arith.constant 0 : index
    %10 = vector.load %arg5[%c0_9, %c0_10] : memref<1x32xf32, #tpu.memory_space<vmem>>, vector<1x32xf32>
    %11 = vector.broadcast %10 : vector<1x32xf32> to vector<8x32xf32>
    %12 = arith.addf %9, %11 : vector<8x32xf32>
    %c0_11 = arith.constant 0 : index
    %c0_12 = arith.constant 0 : index
    %13 = vector.load %arg6[%c0_11, %c0_12] : memref<8x32xf32, #tpu.memory_space<vmem>>, vector<8x32xf32>
    tpu.vector_store %arg6[%c0_11, %c0_12], %12 {strides = array<i32>} : memref<8x32xf32, #tpu.memory_space<vmem>>, vector<8x32xf32>,
    return
  }
  func.func @transform_0(%arg0: i32) -> (i32, i32) {
    %c0_i32 = arith.constant 0 : i32
    %c0_i32_0 = arith.constant 0 : i32
    return %arg0, %c0_i32 : i32, i32
  }
  func.func @transform_1(%arg0: i32) -> (i32, i32) {
    %c0_i32 = arith.constant 0 : i32
    %c0_i32_0 = arith.constant 0 : i32
    %c0_i32_1 = arith.constant 0 : i32
    return %c0_i32, %c0_i32_0 : i32, i32
  }
  func.func @transform_2(%arg0: i32) -> (i32, i32) {
    %c0_i32 = arith.constant 0 : i32
    %c0_i32_0 = arith.constant 0 : i32
    %c0_i32_1 = arith.constant 0 : i32
    return %c0_i32, %c0_i32_0 : i32, i32
  }
  func.func @transform_3(%arg0: i32) -> (i32, i32) {
    %c0_i32 = arith.constant 0 : i32
    %c0_i32_0 = arith.constant 0 : i32
    %c0_i32_1 = arith.constant 0 : i32
    return %c0_i32, %c0_i32_0 : i32, i32
  }
  func.func @transform_4(%arg0: i32) -> (i32, i32) {
    %c0_i32 = arith.constant 0 : i32
    %c0_i32_0 = arith.constant 0 : i32
    %c0_i32_1 = arith.constant 0 : i32
    return %c0_i32, %c0_i32_0 : i32, i32
  }
  func.func @transform_5(%arg0: i32) -> (i32, i32) {
    %c0_i32 = arith.constant 0 : i32
    %c0_i32_0 = arith.constant 0 : i32
    return %arg0, %c0_i32 : i32, i32
  }
}

</mosaic_0001>

<bundles_post_ra>
// kernel: tpu_custom_call.1
= control target key start
LH: loop header
LB: loop body
LE: loop exit
PB: predicated region body
PF: predicated region fallthrough
CT: control target
= control target key end

     0   :  { %v366_v3 = vmov 0.0|0.0   ;;  %vm367_vm0 = vmmov 0   ;;  %v368_v6 = vmov 0.0   ;;  %s490_s0 = inlined_call_operand.vmem [shape: f32[8,120], index: 0, kind: input, shape index: {}]   ;;  %s491_s1 = inlined_call_operand.vmem [shape: f32[120,64], index: 1, kind: input, shape index: {}]   ;;  %s492_s2 = inlined_call_operand.vmem [shape: f32[1,64], index: 2, kind: input, shape index: {}]   ;;  %s493_s3 = inlined_call_operand.vmem [shape: f32[64,32], index: 3, kind: input, shape index: {}]   ;;  %s494_s4 = inlined_call_operand.vmem [shape: f32[1,32], index: 4, kind: input, shape index: {}]   ;;  %s495_s5 = inlined_call_operand.hbm [shape: f32[8,32], index: 5, kind: output, shape index: {}]  }
   0x1   :  { %v22_v0 = vld [vmem:[%s491_s1] sm:$0xff]  ;;  %v23_v1 = vld [vmem:[%s491_s1 + $0x8] sm:$0xff]  ;;  %v24_v2 = vld [vmem:[%s491_s1 + $0x10] sm:$0xff]  ;;  %305 = vmatprep.subr.bf16.mxu0 %v366_v3  ;;  %283 = vmatprep.mubr.msk.f32.mxu0 %vm367_vm0, %v368_v6 }
   0x2   :  { %v306_v4 = vpack.c.bf16 %v23_v1, %v22_v0  ;;  %v25_v5 = vld [vmem:[%s491_s1 + $0x18] sm:$0xff]  ;;  %326 = vmatprep.subr.bf16.mxu1 %v366_v3  ;;  %302 = vmatprep.mubr.msk.f32.mxu1 %vm367_vm0, %v368_v6  ;;  %v26_v8 = vld [vmem:[%s491_s1 + $0x20] sm:$0xff]  ;;  %v27_v9 = vld [vmem:[%s491_s1 + $0x28] sm:$0xff] }
   0x3   :  { %v309_v7 = vpack.c.bf16 %v25_v5, %v24_v2  ;;  %v119_v10 = vld [vmem:[%s493_s3] sm:$0xff]  ;;  %v120_v11 = vld [vmem:[%s493_s3 + $0x8] sm:$0xff]  ;;  %v121_v13 = vld [vmem:[%s493_s3 + $0x10] sm:$0xff]  ;;  %v312_v15 = vpack.c.bf16 %v27_v9, %v26_v8 }
   0x4   :  { %307 = vmatpush3.bf16.msra.mxu0 %v306_v4  ;;  %v327_v12 = vpack.c.bf16 %v120_v11, %v119_v10  ;;  %v122_v14 = vld [vmem:[%s493_s3 + $0x18] sm:$0xff] }
   0x5   :  { %308 = vmatprep.subr.bf16.mxu0 %v366_v3 }
   0x8   :  { %310 = vmatpush3.bf16.msra.mxu0 %v309_v7 }
   0x9   :  { %10 = vsyncpa [#allocation3], 0  ;;  %311 = vmatprep.subr.bf16.mxu0 %v366_v3  ;;  %v28_v16 = vld [vmem:[%s491_s1 + $0x30] sm:$0xff]  ;;  %v29_v17 = vld [vmem:[%s491_s1 + $0x38] sm:$0xff]  ;;  %328 = vmatpush3.bf16.msra.mxu1 %v327_v12  ;;  %v330_v18 = vpack.c.bf16 %v122_v14, %v121_v13  ;;  %vm44_vm1 = vcmask 982016   ;;  %vm134_vm2 = vcmask 523264  }
   0xa   :  { %329 = vmatprep.subr.bf16.mxu1 %v366_v3  ;;  %v123_v19 = vld [vmem:[%s493_s3 + $0x20] sm:$0xff]  ;;  %v124_v20 = vld [vmem:[%s493_s3 + $0x28] sm:$0xff]  ;;  %v315_v21 = vpack.c.bf16 %v29_v17, %v28_v16  ;;  %v32_v26 = vld [vmem:[%s491_s1 + $0x50] sm:$0xff]  ;;  %s369_s18 = smov [#allocation2]   ;;  %vm208_vm3 = vcmask 261120  }
   0xb   :  { %v30_v22 = vld [vmem:[%s491_s1 + $0x40] sm:$0xff]  ;;  %v31_v23 = vld [vmem:[%s491_s1 + $0x48] sm:$0xff]  ;;  %v333_v24 = vpack.c.bf16 %v124_v20, %v123_v19  ;;  %v33_v27 = vld [vmem:[%s491_s1 + $0x58] sm:$0xff]  ;;  %s216_s19 = sshll.u32 %s369_s18, 4  ;;  %s217_s19 = int_to_ptr.vmem [resolvable:$true] %s216_s19 }
   0xc   :  { %313 = vmatpush3.bf16.msra.mxu0 %v312_v15  ;;  %v318_v25 = vpack.c.bf16 %v31_v23, %v30_v22  ;;  %v321_v28 = vpack.c.bf16 %v33_v27, %v32_v26  ;;  %v34_v29 = vld [vmem:[%s491_s1 + $0x60] sm:$0xff]  ;;  %v35_v30 = vld [vmem:[%s491_s1 + $0x68] sm:$0xff]  ;;  %v36_v32 = vld [vmem:[%s491_s1 + $0x70] sm:$0xff]  ;;  %p347_p1 = scmp.lt.s32.totalorder %s217_s19, %s217_s19 }
   0xd   :  { %314 = vmatprep.subr.bf16.mxu0 %v366_v3  ;;  %331 = vmatpush3.bf16.msra.mxu1 %v330_v18  ;;  %v324_v31 = vpack.c.bf16 %v35_v30, %v34_v29  ;;  %v21_v33 = vld [vmem:[%s490_s0] sm:$0xff]  ;;  %v125_v34 = vld [vmem:[%s493_s3 + $0x30] sm:$0xff]  ;;  %v126_v35 = vld [vmem:[%s493_s3 + $0x38] sm:$0xff]  ;;  %s342_s3 = scalar_lea.vmem %s217_s19, 128 }
   0xe   :  { %332 = vmatprep.subr.bf16.mxu1 %v366_v3  ;;  %v336_v36 = vpack.c.bf16 %v126_v35, %v125_v34  ;;  %v224_v37 = vld [vmem:[%s492_s2] ss:$0 sm:$0xff]  ;;  %p343_p0 = scmp.ne.s32.totalorder %s217_s19, %s342_s3  ;;  %p348_p2 = scmp.lt.s32.totalorder %s342_s3, %s342_s3 }
   0xf   :  { %v226_v42 = vld [vmem:[%s494_s4] ss:$0 sm:$0xff] }
  0x10   :  { %316 = vmatpush3.bf16.msra.mxu0 %v315_v21  ;;  %p349_p3 = por %p348_p2, %p347_p1 }
  0x11   :  { %317 = vmatprep.subr.bf16.mxu0 %v366_v3  ;;  %334 = vmatpush3.bf16.msra.mxu1 %v333_v24 }
  0x12   :  { %335 = vmatprep.subr.bf16.mxu1 %v366_v3  ;;  %p350_p4 = pnand %p349_p3, %p343_p0 }
  0x14   :  { %319 = vmatpush3.bf16.msra.mxu0 %v318_v25 }
  0x15   :  { %320 = vmatprep.subr.bf16.mxu0 %v366_v3  ;;  %337 = vmatpush3.bf16.msra.mxu1 %v336_v36 }
  0x18   :  { %322 = vmatpush3.bf16.msra.mxu0 %v321_v28 }
  0x19   :  { %323 = vmatprep.subr.bf16.mxu0 %v366_v3 }
  0x1c   :  { %325 = vmatpush3.bf16.msra.mxu0 %v324_v31 }
  0x1d   :  { %281 = vmatprep.subr.mxu0 %v368_v6 }
  0x20   :  { %282 = vmatpush3.msra.mxu0 %v36_v32 }
  0x21   :  { %284 = vmatmul.mubr.msk.f32.vlgmr.msra.gmra.mrb[0].mxu0 %vm44_vm1, %v21_v33 }
  0xf4   :  { %v114_v38 = vpop.f32.mrb[0].mxu0 }
  0xf5   :  { %v115_v39 = vadd.f32 %v224_v37, %v114_v38  ;;  %v285_v40 = vpop.f32.mrb[1].mxu0 }
  0xf7   :  { %v118_v41 = vmax.f32 %v115_v39, 0.0 }
  0xf9   :  { %303 = vmatmul.mubr.msk.f32.vlgmr.msra.gmra.mrb[0].mxu1 %vm134_vm2, %v118_v41 }
 0x1cc   :  { %v204_v43 = vpop.f32.mrb[0].mxu1 }
 0x1cd   :  { %v205_v44 = vadd.f32 %v226_v42, %v204_v43  ;;  %v304_v45 = vpop.f32.mrb[1].mxu1 }
 0x1cf   :  { %209 = vst.msk [vmem:[#allocation2] sm:$0xff] %vm208_vm3, %v205_v44 }
 0x1d0   :  { %353 = shalt.err (!%p350_p4)
}
 0x1d1   :  { %s354_s21 = scalar_lea.hbm %s495_s5, 128 }
 0x1d2   :  { %p355_p5 = scmp.ne.s32.totalorder %s495_s5, %s354_s21  ;;  %p358_p6 = scmp.lt.u32.totalorder %s354_s21, %s495_s5 }
 0x1d4   :  { %p360_p7 = pnand %p358_p6, %p355_p5 }
 0x1d6   :  { %363 = shalt.err (!%p360_p7)
}
 0x1d7   :  { %219 = dma.vmem_to_hbm [thread:$0]  %s217_s19, 128, %s495_s5, [#allocation3]  }
 0x1d8   :  { %364 = dma.done.wait [#allocation3], 128  }
 0x1d9   :  { %365 = vsyncadd [#allocation3], 4294967168 }
 0x1da   :  { %223 = vsyncpa [#allocation3], 1 }

</bundles_post_ra>
